<compile_context>
chip_gen: v6e
topology: v6e:2x2x1
jax: 0.10.0
libtpu: 0.0.40
codegen_flags: <defaults>
</compile_context>

<pallas_src>
import functools
import math

import jax
import jax.numpy as jnp
from jax.experimental import pallas as pl
from jax.experimental.pallas import tpu as pltpu


def _fused_decoder_kernel(
    # resident inputs (block index never changes)
    x_ref,            # (B, D)   f32  initial activation
    src_hbm,          # (B, S, D) bf16, memory_space=ANY (copied once into src_scr)
    mask_ref,         # (B, 1, S) f32  additive key-padding mask
    hexp_ref,         # (H, D)   f32  head indicator: hexp[h, d] = (d // head_dim == h)
    # per-layer packed slabs (leading layer axis; block selected by grid index)
    wbig_ref,         # (1, 2, D, 4D) bf16 : [0] = [Wk|Wv|Wq|Wo], [1] = W1
    w2_ref,           # (1, FF, D)    bf16
    vecs_ref,         # (1, 12, D)    f32  : sa_const,bq,bk,bv,bo,b2,g1,be1,g2,be2,g3,be3
    b1_ref,           # (1, 1, FF)    f32
    # output
    o_ref,            # (B, D)   f32
    # scratch
    x_scr,            # (B, D)   f32  carried activation
    src_scr,          # (B, S, D) bf16 src memory, resident after layer 0
    src_sem,          # DMA semaphore for the one-time src copy
    *, nhead):
    l = pl.program_id(0)
    B, D = x_scr.shape
    S = src_scr.shape[1]
    scale = 1.0 / math.sqrt(D // nhead)

    @pl.when(l == 0)
    def _prologue():
        x_scr[...] = x_ref[...]
        cp = pltpu.make_async_copy(src_hbm, src_scr, src_sem)   # single src HBM->VMEM copy
        cp.start()
        cp.wait()

    def vec(i):                                  # (1, D) f32 row of the packed bias slab
        return vecs_ref[0, i:i + 1, :]

    def layernorm(y, gi, bi):                    # f32 elementwise math (v5e-safe)
        mu = jnp.mean(y, axis=-1, keepdims=True)
        var = jnp.mean(jnp.square(y - mu), axis=-1, keepdims=True)
        return (y - mu) * jax.lax.rsqrt(var + 1e-5) * vec(gi) + vec(bi)

    x = x_scr[...]                                              # (B, D) f32

    # --- self attention over the post-reset zero self-memory --------------------------------
    # softmax over a single (zero) key is 1 and the value is b_v, so the block is the per-layer
    # constant row out_proj(b_v) + b_o (== vec(0), precomputed in the wrapper).
    t = layernorm(x + vec(0), 6, 7)
    t_b = t.astype(jnp.bfloat16)

    # --- cross attention over src_memory with key_padding_mask ------------------------------
    w_kv = wbig_ref[0, 0, :, 0:2 * D]                           # (D, 2D) bf16  [Wk | Wv]
    w_q = wbig_ref[0, 0, :, 2 * D:3 * D]                        # (D, D)  bf16
    w_o = wbig_ref[0, 0, :, 3 * D:4 * D]                        # (D, D)  bf16

    q = (jnp.dot(t_b, w_q, preferred_element_type=jnp.float32) + vec(1)) * scale    # (B, D) f32
    src2 = src_scr[...].reshape(B * S, D)                                           # bf16
    kv = jnp.dot(src2, w_kv, preferred_element_type=jnp.float32)                    # (B*S, 2D) f32
    k = (kv[:, :D] + vec(2)).astype(jnp.bfloat16).reshape(B, S, D)                  # bf16
    v = (kv[:, D:2 * D] + vec(3)).astype(jnp.bfloat16).reshape(B, S, D)             # bf16

    hexp = hexp_ref[...]                                                            # (H, D) f32
    qh = (q[:, None, :] * hexp[None, :, :]).astype(jnp.bfloat16)                    # (B, H, D)
    # head-batched scores with S on the lane dim -> lane-dense softmax chain.
    s = jnp.einsum('bhd,bsd->bhs', qh, k, preferred_element_type=jnp.float32)       # (B, H, S)
    s = s + mask_ref[...]                           # additive key-padding mask (broadcast over H)
    # NOTE: a fully-masked row yields a uniform softmax here (PyTorch would produce NaN).
    s = s - jnp.max(s, axis=-1, keepdims=True)
    p = jnp.exp(s)
    p = p * pl.reciprocal(jnp.sum(p, axis=-1, keepdims=True), approx=True)
    # MXU contraction over S for the attention output (no VPU reduce over S).
    pv = jnp.einsum('bhs,bsd->bhd', p.astype(jnp.bfloat16), v,
                    preferred_element_type=jnp.float32)                             # (B, H, D)
    attn = jnp.sum(pv * hexp[None, :, :], axis=1)                                   # (B, D) f32
    t2 = jnp.dot(attn.astype(jnp.bfloat16), w_o, preferred_element_type=jnp.float32) + vec(4)
    t = layernorm(t + t2, 8, 9)

    # --- feed-forward: linear2(relu(linear1(t))) ---------------------------------------------
    h1 = jnp.maximum(
        jnp.dot(t.astype(jnp.bfloat16), wbig_ref[0, 1],
                preferred_element_type=jnp.float32) + b1_ref[0], 0.0)
    t2 = jnp.dot(h1.astype(jnp.bfloat16), w2_ref[0],
                 preferred_element_type=jnp.float32) + vec(5)
    t = layernorm(t + t2, 10, 11)

    x_scr[...] = t                                              # carry activation to next layer

    @pl.when(l == pl.num_programs(0) - 1)
    def _store_output():
        o_ref[...] = t


def fused_decoder_stack(x, src, add_mask, hexp, layer_args, *, nhead, num_layers):
    B, D = x.shape
    S = src.shape[1]
    FF = layer_args[3].shape[2]                                 # b1: (L, 1, FF)

    def resident_spec(a):
        nd = a.ndim
        return pl.BlockSpec(a.shape, lambda l, _n=nd: (0,) * _n)

    def per_layer_spec(a):
        nd = a.ndim
        return pl.BlockSpec((1,) + a.shape[1:], lambda l, _n=nd: (l,) + (0,) * (_n - 1))

    in_specs = ([resident_spec(x),
                 pl.BlockSpec(memory_space=pl.ANY),             # src: stays in HBM, manual DMA
                 resident_spec(add_mask),
                 resident_spec(hexp)]
                + [per_layer_spec(a) for a in layer_args])

    # advisory cost estimate so XLA can schedule the surrounding gather/transpose around it
    flops = 2 * num_layers * (B * D * D + 2 * B * S * D * D + 2 * B * nhead * S * D
                              + B * D * D + 2 * B * D * FF)
    bytes_accessed = int(src.size * src.dtype.itemsize
                         + sum(a.size * a.dtype.itemsize for a in (x, add_mask, hexp))
                         + sum(a.size * a.dtype.itemsize for a in layer_args) + B * D * 4)
    cost = pl.CostEstimate(flops=flops, transcendentals=num_layers * B * nhead * S,
                           bytes_accessed=bytes_accessed)

    # VMEM budget: src scratch (single-buffered) + 2x small resident blocks + 2x streamed
    # per-layer weight slabs + output/activation scratch + slack.  Cap is hardware-aware:
    # ~48 MiB on 64-MiB-VMEM parts (v7x), ~100 MiB on 128-MiB parts (v5e/v6e).
    src_bytes = src.size * src.dtype.itemsize
    small_bytes = sum(a.size * a.dtype.itemsize for a in (x, add_mask, hexp))
    layer_block_bytes = sum(math.prod(a.shape[1:]) * a.dtype.itemsize for a in layer_args)
    want = src_bytes + 2 * small_bytes + 2 * layer_block_bytes + 2 * B * D * 4 + (4 << 20)
    try:
        phys = int(getattr(pltpu.get_tpu_info(), "vmem_capacity_bytes", 64 << 20))
    except Exception:
        phys = 64 << 20
    cap = (100 << 20) if phys >= (96 << 20) else (48 << 20)
    vmem_limit = int(min(max(want, 16 << 20), cap))

    # TODO(synk): for D >= ~768 on 64-MiB-VMEM parts (v7x) tile the FF / attention weight slabs
    #             over an inner grid axis instead of streaming whole (D,4D)/(4D,D) blocks.
    # TODO(synk): weight-DMA-bound decode could store weights int8 (v5e/v6e) / fp8 (v7x) with
    #             per-output-channel scales applied after the f32 accumulation.
    # TODO(synk): for large-batch / prefill shapes add a leading "parallel" batch-tile grid
    #             axis so both v7x TensorCores are used; not worth it for small-B decode.

    grid_spec = pltpu.PrefetchScalarGridSpec(
        num_scalar_prefetch=0,
        grid=(num_layers,),
        in_specs=in_specs,
        out_specs=pl.BlockSpec((B, D), lambda l: (0, 0)),
        scratch_shapes=[pltpu.VMEM((B, D), jnp.float32),
                        pltpu.VMEM((B, S, D), jnp.bfloat16),
                        pltpu.SemaphoreType.DMA(())],
    )
    return pl.pallas_call(
        functools.partial(_fused_decoder_kernel, nhead=nhead),
        out_shape=jax.ShapeDtypeStruct((B, D), jnp.float32),
        grid_spec=grid_spec,
        compiler_params=pltpu.CompilerParams(
            dimension_semantics=("arbitrary",),                 # activation carried layer->layer
            vmem_limit_bytes=vmem_limit),
        cost_estimate=cost,
    )(x, src, add_mask, hexp, *layer_args)


def init_params(key, input_size, hidden_size, num_layers, nhead):
    d, ff, L = hidden_size, 4 * hidden_size, num_layers
    ks = jax.random.split(key, 12)
    bf = jnp.bfloat16

    def w(k, shape, dtype=jnp.float32):
        return (0.05 * jax.random.normal(k, shape, jnp.float32)).astype(dtype)

    return {
        'time_emb': w(ks[0], (100, d // 2)),               # nn.Embedding(100, D/2)
        'embed_w': w(ks[1], (input_size, d // 2)),         # Linear(input, D/2), (in, out) layout
        'embed_b': jnp.zeros((1, d // 2), jnp.float32),
        # self-attention: with post-reset zero memory only b_v / W_o / b_o survive.
        'sa_bv': w(ks[2], (L, 1, d)),
        'sa_wo': w(ks[3], (L, d, d)),
        'sa_bo': jnp.zeros((L, 1, d), jnp.float32),
        # cross attention: weights pre-transposed to (in, out), stored bf16
        'ca_wq': w(ks[4], (L, d, d), bf), 'ca_wk': w(ks[5], (L, d, d), bf),
        'ca_wv': w(ks[6], (L, d, d), bf), 'ca_wo': w(ks[7], (L, d, d), bf),
        'ca_bq': jnp.zeros((L, 1, d), jnp.float32), 'ca_bk': jnp.zeros((L, 1, d), jnp.float32),
        'ca_bv': jnp.zeros((L, 1, d), jnp.float32), 'ca_bo': jnp.zeros((L, 1, d), jnp.float32),
        # feed-forward (dim_feedforward = 4*D)
        'w1': w(ks[8], (L, d, ff), bf), 'b1': jnp.zeros((L, 1, ff), jnp.float32),
        'w2': w(ks[9], (L, ff, d), bf), 'b2': jnp.zeros((L, 1, d), jnp.float32),
        # layernorm 1/2/3 (gamma=1, beta=0 as in PyTorch init)
        'g1': jnp.ones((L, 1, d), jnp.float32), 'be1': jnp.zeros((L, 1, d), jnp.float32),
        'g2': jnp.ones((L, 1, d), jnp.float32), 'be2': jnp.zeros((L, 1, d), jnp.float32),
        'g3': jnp.ones((L, 1, d), jnp.float32), 'be3': jnp.zeros((L, 1, d), jnp.float32),
    }


def _pack_layer_slabs(params):
    """Pack the 19 per-layer tensors into 4 DMA slabs (do once per weight set in deployment)."""
    D = params['ca_wq'].shape[1]
    FF = params['w1'].shape[2]
    assert FF == 4 * D, "module fixes dim_feedforward = 4 * hidden_size"
    # post-reset self-attention collapses to the constant row out_proj(b_v) + b_o per layer
    sa_const = jnp.einsum('lkd,lde->lke', params['sa_bv'], params['sa_wo']) + params['sa_bo']
    w_attn = jnp.concatenate([params['ca_wk'], params['ca_wv'],
                              params['ca_wq'], params['ca_wo']], axis=-1)      # (L, D, 4D) bf16
    w_big = jnp.stack([w_attn, params['w1']], axis=1)                          # (L, 2, D, 4D)
    vecs = jnp.concatenate([sa_const,
                            params['ca_bq'], params['ca_bk'], params['ca_bv'], params['ca_bo'],
                            params['b2'],
                            params['g1'], params['be1'],
                            params['g2'], params['be2'],
                            params['g3'], params['be3']], axis=1)              # (L, 12, D) f32
    return (w_big, params['w2'], vecs, params['b1'])


def decoder_transformer_forward(params, inp, timestep, src_memory, src_memory_mask, nhead):
    """One decoding step immediately after reset(batch_size): self-memory K/V = 1 zero entry."""
    # TODO(synk): general M>1 self-memory path (later decode steps where outputs are appended
    #             to keys/values) not implemented; kernel covers the documented post-reset call.
    B = inp.shape[0]
    D = 2 * params['embed_w'].shape[1]
    L = params['ca_wq'].shape[0]
    hd = D // nhead

    # TODO(synk): embedding-table gather (nn.Embedding) + input Linear/concat stay in XLA glue.
    temb = jnp.take(params['time_emb'], timestep, axis=0)                      # (B, D/2)
    emb = jnp.dot(inp, params['embed_w']) + params['embed_b']                  # (B, D/2)
    x = jnp.concatenate([emb, temb], axis=-1).astype(jnp.float32)              # (B, D); dropout=id

    src = jnp.transpose(src_memory, (1, 0, 2)).astype(jnp.bfloat16)            # (S,B,D)->(B,S,D)
    S = src.shape[1]
    if src_memory_mask is None:
        add_mask = jnp.zeros((B, 1, S), jnp.float32)
    else:
        add_mask = jnp.where(src_memory_mask, -1e9, 0.0).astype(jnp.float32)[:, None, :]

    # head indicator (H, D): hexp[h, d] = 1 iff lane d belongs to head h
    hexp = (jnp.arange(D)[None, :] // hd == jnp.arange(nhead)[:, None]).astype(jnp.float32)

    layer_args = _pack_layer_slabs(params)
    return fused_decoder_stack(x, src, add_mask, hexp, layer_args,
                               nhead=nhead, num_layers=L)


if __name__ == "__main__":
    B, input_size, hidden, num_layers, nhead, S = 2, 16, 32, 2, 4, 8
    root = jax.random.PRNGKey(0)
    kp, ki, ks = jax.random.split(root, 3)

    params = init_params(kp, input_size, hidden, num_layers, nhead)
    inp = jax.random.normal(ki, (B, input_size), jnp.float32)
    timestep = jnp.array([3, 7], dtype=jnp.int32)
    src_memory = jax.random.normal(ks, (S, B, hidden), jnp.float32)            # PyTorch (S, B, D)
    src_memory_mask = jnp.zeros((B, S), dtype=bool).at[:, S - 2:].set(True)    # last 2 keys padded

    out = decoder_transformer_forward(params, inp, timestep, src_memory, src_memory_mask, nhead)
    jax.block_until_ready(out)
    assert out.shape == (B, hidden) and out.dtype == jnp.float32
    assert bool(jnp.all(jnp.isfinite(out)))
    print("KERNEL_OK")
</pallas_src>

<mosaic_0001>
module attributes {stable_mosaic.version = 11 : i64} {
  func.func @_fused_decoder_kernel(%arg0: i32, %arg1: memref<2x32xf32, #tpu.memory_space<vmem>>, %arg2: memref<2x8x32xbf16, #tpu.memory_space<any>>, %arg3: memref<2x1x8xf32, #tpu.memory_space<vmem>>, %arg4: memref<4x32xf32, #tpu.memory_space<vmem>>, %arg5: memref<1x2x32x128xbf16, #tpu.memory_space<vmem>>, %arg6: memref<1x128x32xbf16, #tpu.memory_space<vmem>>, %arg7: memref<1x12x32xf32, #tpu.memory_space<vmem>>, %arg8: memref<1x1x128xf32, #tpu.memory_space<vmem>>, %arg9: memref<2x32xf32, #tpu.memory_space<vmem>>, %arg10: memref<2x32xf32, #tpu.memory_space<vmem>>, %arg11: memref<2x8x32xbf16, #tpu.memory_space<vmem>>, %arg12: memref<!tpu.dma_semaphore, #tpu.memory_space<semaphore_mem>>) attributes {dimension_semantics = [#tpu.dimension_semantics<arbitrary>], iteration_bounds = array<i64: 2>, scalar_prefetch = 0 : i64, scratch_operands = 3 : i64, tpu.core_type = #tpu.core_type<tc>, window_params = [{pipeline_mode = #tpu.pipeline_mode<synchronous>, transform_indices = @transform_0, window_bounds = array<i64: 2, 32>}, {}, {pipeline_mode = #tpu.pipeline_mode<synchronous>, transform_indices = @transform_2, window_bounds = array<i64: 2, 1, 8>}, {pipeline_mode = #tpu.pipeline_mode<synchronous>, transform_indices = @transform_3, window_bounds = array<i64: 4, 32>}, {transform_indices = @transform_4, window_bounds = array<i64: 1, 2, 32, 128>}, {transform_indices = @transform_5, window_bounds = array<i64: 1, 128, 32>}, {transform_indices = @transform_6, window_bounds = array<i64: 1, 12, 32>}, {transform_indices = @transform_7, window_bounds = array<i64: 1, 1, 128>}, {pipeline_mode = #tpu.pipeline_mode<synchronous>, transform_indices = @transform_8, window_bounds = array<i64: 2, 32>}]} {
    %c0_i32 = arith.constant 0 : i32
    %0 = arith.cmpi eq, %arg0, %c0_i32 : i32
    %1 = arith.extui %0 : i1 to i32
    %c0_i32_0 = arith.constant 0 : i32
    %2 = arith.cmpi ne, %1, %c0_i32_0 : i32
    scf.if %2 {
      %c0_84 = arith.constant 0 : index
      %c0_85 = arith.constant 0 : index
      %174 = vector.load %arg1[%c0_84, %c0_85] : memref<2x32xf32, #tpu.memory_space<vmem>>, vector<2x32xf32>
      %c0_86 = arith.constant 0 : index
      %c0_87 = arith.constant 0 : index
      %175 = vector.load %arg10[%c0_86, %c0_87] : memref<2x32xf32, #tpu.memory_space<vmem>>, vector<2x32xf32>
      tpu.vector_store %arg10[%c0_86, %c0_87], %174 {strides = array<i32>} : memref<2x32xf32, #tpu.memory_space<vmem>>, vector<2x32xf32>,
      tpu.enqueue_dma source(%arg2 : memref<2x8x32xbf16, #tpu.memory_space<any>>) target(%arg11 : memref<2x8x32xbf16, #tpu.memory_space<vmem>>) target_semaphore(%arg12 : memref<!tpu.dma_semaphore, #tpu.memory_space<semaphore_mem>>)
      tpu.wait_dma2 semaphore(%arg12 : memref<!tpu.dma_semaphore, #tpu.memory_space<semaphore_mem>>) src(%arg2 : memref<2x8x32xbf16, #tpu.memory_space<any>>) dst(%arg11 : memref<2x8x32xbf16, #tpu.memory_space<vmem>>)
    } else {
    }
    %c0 = arith.constant 0 : index
    %c0_1 = arith.constant 0 : index
    %3 = vector.load %arg10[%c0, %c0_1] : memref<2x32xf32, #tpu.memory_space<vmem>>, vector<2x32xf32>
    %c0_2 = arith.constant 0 : index
    %c0_3 = arith.constant 0 : index
    %c0_4 = arith.constant 0 : index
    %4 = vector.load %arg7[%c0_2, %c0_3, %c0_4] : memref<1x12x32xf32, #tpu.memory_space<vmem>>, vector<1x1x32xf32>
    %5 = vector.shape_cast %4 : vector<1x1x32xf32> to vector<1x32xf32>
    %6 = vector.broadcast %5 : vector<1x32xf32> to vector<2x32xf32>
    %7 = arith.addf %3, %6 : vector<2x32xf32>
    %cst = arith.constant dense<0.000000e+00> : vector<2xf32>
    %8 = vector.multi_reduction <add>, %7, %cst [1] : vector<2x32xf32> to vector<2xf32>
    %9 = vector.shape_cast %8 : vector<2xf32> to vector<2x1xf32>
    %cst_5 = arith.constant 3.200000e+01 : f32
    %10 = vector.broadcast %cst_5 : f32 to vector<2x1xf32>
    %11 = arith.divf %9, %10 : vector<2x1xf32>
    %12 = vector.broadcast %11 : vector<2x1xf32> to vector<2x32xf32>
    %13 = arith.subf %7, %12 : vector<2x32xf32>
    %14 = arith.mulf %13, %13 : vector<2x32xf32>
    %cst_6 = arith.constant dense<0.000000e+00> : vector<2xf32>
    %15 = vector.multi_reduction <add>, %14, %cst_6 [1] : vector<2x32xf32> to vector<2xf32>
    %16 = vector.shape_cast %15 : vector<2xf32> to vector<2x1xf32>
    %cst_7 = arith.constant 3.200000e+01 : f32
    %17 = vector.broadcast %cst_7 : f32 to vector<2x1xf32>
    %18 = arith.divf %16, %17 : vector<2x1xf32>
    %19 = vector.broadcast %11 : vector<2x1xf32> to vector<2x32xf32>
    %20 = arith.subf %7, %19 : vector<2x32xf32>
    %cst_8 = arith.constant 9.99999974E-6 : f32
    %21 = vector.broadcast %cst_8 : f32 to vector<2x1xf32>
    %22 = arith.addf %18, %21 : vector<2x1xf32>
    %23 = math.rsqrt %22 : vector<2x1xf32>
    %24 = vector.broadcast %23 : vector<2x1xf32> to vector<2x32xf32>
    %25 = arith.mulf %20, %24 : vector<2x32xf32>
    %c0_9 = arith.constant 0 : index
    %c6 = arith.constant 6 : index
    %c0_10 = arith.constant 0 : index
    %26 = vector.load %arg7[%c0_9, %c6, %c0_10] : memref<1x12x32xf32, #tpu.memory_space<vmem>>, vector<1x1x32xf32>
    %27 = vector.shape_cast %26 : vector<1x1x32xf32> to vector<1x32xf32>
    %28 = vector.broadcast %27 : vector<1x32xf32> to vector<2x32xf32>
    %29 = arith.mulf %25, %28 : vector<2x32xf32>
    %c0_11 = arith.constant 0 : index
    %c7 = arith.constant 7 : index
    %c0_12 = arith.constant 0 : index
    %30 = vector.load %arg7[%c0_11, %c7, %c0_12] : memref<1x12x32xf32, #tpu.memory_space<vmem>>, vector<1x1x32xf32>
    %31 = vector.shape_cast %30 : vector<1x1x32xf32> to vector<1x32xf32>
    %32 = vector.broadcast %31 : vector<1x32xf32> to vector<2x32xf32>
    %33 = arith.addf %29, %32 : vector<2x32xf32>
    %34 = arith.truncf %33 : vector<2x32xf32> to vector<2x32xbf16>
    %c0_13 = arith.constant 0 : index
    %c0_14 = arith.constant 0 : index
    %c0_15 = arith.constant 0 : index
    %c0_16 = arith.constant 0 : index
    %35 = vector.load %arg5[%c0_13, %c0_14, %c0_15, %c0_16] : memref<1x2x32x128xbf16, #tpu.memory_space<vmem>>, vector<1x1x32x64xbf16>
    %36 = vector.shape_cast %35 : vector<1x1x32x64xbf16> to vector<32x64xbf16>
    %c0_17 = arith.constant 0 : index
    %c0_18 = arith.constant 0 : index
    %c0_19 = arith.constant 0 : index
    %c64 = arith.constant 64 : index
    %37 = vector.load %arg5[%c0_17, %c0_18, %c0_19, %c64] : memref<1x2x32x128xbf16, #tpu.memory_space<vmem>>, vector<1x1x32x32xbf16>
    %38 = vector.shape_cast %37 : vector<1x1x32x32xbf16> to vector<32x32xbf16>
    %c0_20 = arith.constant 0 : index
    %c0_21 = arith.constant 0 : index
    %c0_22 = arith.constant 0 : index
    %c96 = arith.constant 96 : index
    %39 = vector.load %arg5[%c0_20, %c0_21, %c0_22, %c96] : memref<1x2x32x128xbf16, #tpu.memory_space<vmem>>, vector<1x1x32x32xbf16>
    %40 = vector.shape_cast %39 : vector<1x1x32x32xbf16> to vector<32x32xbf16>
    %cst_23 = arith.constant dense<0.000000e+00> : vector<2x32xf32>
    %41 = tpu.matmul %34, %38, %cst_23 {dimension_numbers = #tpu.dot_dimension_numbers<[1], [0], [0], [1], [0, 0, 1, 1], [], []>} : vector<2x32xbf16>, vector<32x32xbf16>, vector<2x32xf32> -> vector<2x32xf32>
    %c0_24 = arith.constant 0 : index
    %c1 = arith.constant 1 : index
    %c0_25 = arith.constant 0 : index
    %42 = vector.load %arg7[%c0_24, %c1, %c0_25] : memref<1x12x32xf32, #tpu.memory_space<vmem>>, vector<1x1x32xf32>
    %43 = vector.shape_cast %42 : vector<1x1x32xf32> to vector<1x32xf32>
    %44 = vector.broadcast %43 : vector<1x32xf32> to vector<2x32xf32>
    %45 = arith.addf %41, %44 : vector<2x32xf32>
    %cst_26 = arith.constant 0.353553385 : f32
    %46 = vector.broadcast %cst_26 : f32 to vector<2x32xf32>
    %47 = arith.mulf %45, %46 : vector<2x32xf32>
    %c0_27 = arith.constant 0 : index
    %c0_28 = arith.constant 0 : index
    %c0_29 = arith.constant 0 : index
    %48 = vector.load %arg11[%c0_27, %c0_28, %c0_29] : memref<2x8x32xbf16, #tpu.memory_space<vmem>>, vector<2x8x32xbf16>
    %49 = vector.shape_cast %48 : vector<2x8x32xbf16> to vector<16x32xbf16>
    %cst_30 = arith.constant dense<0.000000e+00> : vector<16x64xf32>
    %50 = tpu.matmul %49, %36, %cst_30 {dimension_numbers = #tpu.dot_dimension_numbers<[1], [0], [0], [1], [0, 0, 1, 1], [], []>} : vector<16x32xbf16>, vector<32x64xbf16>, vector<16x64xf32> -> vector<16x64xf32>
    %51 = vector.extract_strided_slice %50 {offsets = [0, 0], sizes = [16, 32], strides = [1, 1]} : vector<16x64xf32> to vector<16x32xf32>
    %c0_31 = arith.constant 0 : index
    %c2 = arith.constant 2 : index
    %c0_32 = arith.constant 0 : index
    %52 = vector.load %arg7[%c0_31, %c2, %c0_32] : memref<1x12x32xf32, #tpu.memory_space<vmem>>, vector<1x1x32xf32>
    %53 = vector.shape_cast %52 : vector<1x1x32xf32> to vector<1x32xf32>
    %54 = vector.broadcast %53 : vector<1x32xf32> to vector<16x32xf32>
    %55 = arith.addf %51, %54 : vector<16x32xf32>
    %56 = arith.truncf %55 : vector<16x32xf32> to vector<16x32xbf16>
    %57 = vector.shape_cast %56 : vector<16x32xbf16> to vector<2x8x32xbf16>
    %58 = vector.extract_strided_slice %50 {offsets = [0, 32], sizes = [16, 32], strides = [1, 1]} : vector<16x64xf32> to vector<16x32xf32>
    %c0_33 = arith.constant 0 : index
    %c3 = arith.constant 3 : index
    %c0_34 = arith.constant 0 : index
    %59 = vector.load %arg7[%c0_33, %c3, %c0_34] : memref<1x12x32xf32, #tpu.memory_space<vmem>>, vector<1x1x32xf32>
    %60 = vector.shape_cast %59 : vector<1x1x32xf32> to vector<1x32xf32>
    %61 = vector.broadcast %60 : vector<1x32xf32> to vector<16x32xf32>
    %62 = arith.addf %58, %61 : vector<16x32xf32>
    %63 = arith.truncf %62 : vector<16x32xf32> to vector<16x32xbf16>
    %64 = vector.shape_cast %63 : vector<16x32xbf16> to vector<2x8x32xbf16>
    %c0_35 = arith.constant 0 : index
    %c0_36 = arith.constant 0 : index
    %65 = vector.load %arg4[%c0_35, %c0_36] : memref<4x32xf32, #tpu.memory_space<vmem>>, vector<4x32xf32>
    %66 = vector.shape_cast %47 : vector<2x32xf32> to vector<2x1x32xf32>
    %67 = vector.shape_cast %65 : vector<4x32xf32> to vector<1x4x32xf32>
    %68 = vector.broadcast %66 : vector<2x1x32xf32> to vector<2x4x32xf32>
    %69 = vector.broadcast %67 : vector<1x4x32xf32> to vector<2x4x32xf32>
    %70 = arith.mulf %68, %69 : vector<2x4x32xf32>
    %71 = arith.truncf %70 : vector<2x4x32xf32> to vector<2x4x32xbf16>
    "tpu.trace_start"() <{level = 10 : i32, message = "bhd,bsd->bhs"}> : () -> ()
    %cst_37 = arith.constant dense<0.000000e+00> : vector<2x4x8xf32>
    %72 = tpu.matmul %71, %57, %cst_37 {dimension_numbers = #tpu.dot_dimension_numbers<[2], [2], [1], [1], [0, 0, 0, 1, 1, 1], [0], [0]>} : vector<2x4x32xbf16>, vector<2x8x32xbf16>, vector<2x4x8xf32> -> vector<2x4x8xf32>
    "tpu.trace_stop"() : () -> ()
    %c0_38 = arith.constant 0 : index
    %c0_39 = arith.constant 0 : index
    %c0_40 = arith.constant 0 : index
    %73 = vector.load %arg3[%c0_38, %c0_39, %c0_40] : memref<2x1x8xf32, #tpu.memory_space<vmem>>, vector<2x1x8xf32>
    %74 = vector.broadcast %73 : vector<2x1x8xf32> to vector<2x4x8xf32>
    %75 = arith.addf %72, %74 : vector<2x4x8xf32>
    %cst_41 = arith.constant dense<0xFF800000> : vector<2x4xf32>
    %76 = vector.multi_reduction <maximumf>, %75, %cst_41 [2] : vector<2x4x8xf32> to vector<2x4xf32>
    %77 = vector.shape_cast %76 : vector<2x4xf32> to vector<2x4x1xf32>
    %78 = vector.broadcast %77 : vector<2x4x1xf32> to vector<2x4x8xf32>
    %79 = arith.subf %75, %78 : vector<2x4x8xf32>
    %80 = math.exp %79 : vector<2x4x8xf32>
    %cst_42 = arith.constant dense<0.000000e+00> : vector<2x4xf32>
    %81 = vector.multi_reduction <add>, %80, %cst_42 [2] : vector<2x4x8xf32> to vector<2x4xf32>
    %82 = vector.shape_cast %81 : vector<2x4xf32> to vector<2x4x1xf32>
    %83 = tpu.reciprocal %82 {approx = true} : vector<2x4x1xf32> -> vector<2x4x1xf32>
    %84 = vector.broadcast %83 : vector<2x4x1xf32> to vector<2x4x8xf32>
    %85 = arith.mulf %80, %84 : vector<2x4x8xf32>
    %86 = arith.truncf %85 : vector<2x4x8xf32> to vector<2x4x8xbf16>
    "tpu.trace_start"() <{level = 10 : i32, message = "bhs,bsd->bhd"}> : () -> ()
    %cst_43 = arith.constant dense<0.000000e+00> : vector<2x4x32xf32>
    %87 = tpu.matmul %86, %64, %cst_43 {dimension_numbers = #tpu.dot_dimension_numbers<[2], [1], [1], [2], [0, 0, 0, 1, 1, 2], [0], [0]>} : vector<2x4x8xbf16>, vector<2x8x32xbf16>, vector<2x4x32xf32> -> vector<2x4x32xf32>
    "tpu.trace_stop"() : () -> ()
    %88 = vector.shape_cast %65 : vector<4x32xf32> to vector<1x4x32xf32>
    %89 = vector.broadcast %88 : vector<1x4x32xf32> to vector<2x4x32xf32>
    %90 = arith.mulf %87, %89 : vector<2x4x32xf32>
    %cst_44 = arith.constant dense<0.000000e+00> : vector<2x32xf32>
    %91 = vector.multi_reduction <add>, %90, %cst_44 [1] : vector<2x4x32xf32> to vector<2x32xf32>
    %92 = arith.truncf %91 : vector<2x32xf32> to vector<2x32xbf16>
    %cst_45 = arith.constant dense<0.000000e+00> : vector<2x32xf32>
    %93 = tpu.matmul %92, %40, %cst_45 {dimension_numbers = #tpu.dot_dimension_numbers<[1], [0], [0], [1], [0, 0, 1, 1], [], []>} : vector<2x32xbf16>, vector<32x32xbf16>, vector<2x32xf32> -> vector<2x32xf32>
    %c0_46 = arith.constant 0 : index
    %c4 = arith.constant 4 : index
    %c0_47 = arith.constant 0 : index
    %94 = vector.load %arg7[%c0_46, %c4, %c0_47] : memref<1x12x32xf32, #tpu.memory_space<vmem>>, vector<1x1x32xf32>
    %95 = vector.shape_cast %94 : vector<1x1x32xf32> to vector<1x32xf32>
    %96 = vector.broadcast %95 : vector<1x32xf32> to vector<2x32xf32>
    %97 = arith.addf %93, %96 : vector<2x32xf32>
    %98 = arith.addf %33, %97 : vector<2x32xf32>
    %cst_48 = arith.constant dense<0.000000e+00> : vector<2xf32>
    %99 = vector.multi_reduction <add>, %98, %cst_48 [1] : vector<2x32xf32> to vector<2xf32>
    %100 = vector.shape_cast %99 : vector<2xf32> to vector<2x1xf32>
    %cst_49 = arith.constant 3.200000e+01 : f32
    %101 = vector.broadcast %cst_49 : f32 to vector<2x1xf32>
    %102 = arith.divf %100, %101 : vector<2x1xf32>
    %103 = vector.broadcast %102 : vector<2x1xf32> to vector<2x32xf32>
    %104 = arith.subf %98, %103 : vector<2x32xf32>
    %105 = arith.mulf %104, %104 : vector<2x32xf32>
    %cst_50 = arith.constant dense<0.000000e+00> : vector<2xf32>
    %106 = vector.multi_reduction <add>, %105, %cst_50 [1] : vector<2x32xf32> to vector<2xf32>
    %107 = vector.shape_cast %106 : vector<2xf32> to vector<2x1xf32>
    %cst_51 = arith.constant 3.200000e+01 : f32
    %108 = vector.broadcast %cst_51 : f32 to vector<2x1xf32>
    %109 = arith.divf %107, %108 : vector<2x1xf32>
    %110 = vector.broadcast %102 : vector<2x1xf32> to vector<2x32xf32>
    %111 = arith.subf %98, %110 : vector<2x32xf32>
    %cst_52 = arith.constant 9.99999974E-6 : f32
    %112 = vector.broadcast %cst_52 : f32 to vector<2x1xf32>
    %113 = arith.addf %109, %112 : vector<2x1xf32>
    %114 = math.rsqrt %113 : vector<2x1xf32>
    %115 = vector.broadcast %114 : vector<2x1xf32> to vector<2x32xf32>
    %116 = arith.mulf %111, %115 : vector<2x32xf32>
    %c0_53 = arith.constant 0 : index
    %c8 = arith.constant 8 : index
    %c0_54 = arith.constant 0 : index
    %117 = vector.load %arg7[%c0_53, %c8, %c0_54] : memref<1x12x32xf32, #tpu.memory_space<vmem>>, vector<1x1x32xf32>
    %118 = vector.shape_cast %117 : vector<1x1x32xf32> to vector<1x32xf32>
    %119 = vector.broadcast %118 : vector<1x32xf32> to vector<2x32xf32>
    %120 = arith.mulf %116, %119 : vector<2x32xf32>
    %c0_55 = arith.constant 0 : index
    %c9 = arith.constant 9 : index
    %c0_56 = arith.constant 0 : index
    %121 = vector.load %arg7[%c0_55, %c9, %c0_56] : memref<1x12x32xf32, #tpu.memory_space<vmem>>, vector<1x1x32xf32>
    %122 = vector.shape_cast %121 : vector<1x1x32xf32> to vector<1x32xf32>
    %123 = vector.broadcast %122 : vector<1x32xf32> to vector<2x32xf32>
    %124 = arith.addf %120, %123 : vector<2x32xf32>
    %125 = arith.truncf %124 : vector<2x32xf32> to vector<2x32xbf16>
    %c0_57 = arith.constant 0 : index
    %c1_58 = arith.constant 1 : index
    %c0_59 = arith.constant 0 : index
    %c0_60 = arith.constant 0 : index
    %126 = vector.load %arg5[%c0_57, %c1_58, %c0_59, %c0_60] : memref<1x2x32x128xbf16, #tpu.memory_space<vmem>>, vector<1x1x32x128xbf16>
    %127 = vector.shape_cast %126 : vector<1x1x32x128xbf16> to vector<32x128xbf16>
    %cst_61 = arith.constant dense<0.000000e+00> : vector<2x128xf32>
    %128 = tpu.matmul %125, %127, %cst_61 {dimension_numbers = #tpu.dot_dimension_numbers<[1], [0], [0], [1], [0, 0, 1, 1], [], []>} : vector<2x32xbf16>, vector<32x128xbf16>, vector<2x128xf32> -> vector<2x128xf32>
    %c0_62 = arith.constant 0 : index
    %c0_63 = arith.constant 0 : index
    %c0_64 = arith.constant 0 : index
    %129 = vector.load %arg8[%c0_62, %c0_63, %c0_64] : memref<1x1x128xf32, #tpu.memory_space<vmem>>, vector<1x1x128xf32>
    %130 = vector.shape_cast %129 : vector<1x1x128xf32> to vector<1x128xf32>
    %131 = vector.broadcast %130 : vector<1x128xf32> to vector<2x128xf32>
    %132 = arith.addf %128, %131 : vector<2x128xf32>
    %cst_65 = arith.constant 0.000000e+00 : f32
    %133 = vector.broadcast %cst_65 : f32 to vector<2x128xf32>
    %134 = arith.maximumf %132, %133 : vector<2x128xf32>
    %135 = arith.truncf %134 : vector<2x128xf32> to vector<2x128xbf16>
    %c0_66 = arith.constant 0 : index
    %c0_67 = arith.constant 0 : index
    %c0_68 = arith.constant 0 : index
    %136 = vector.load %arg6[%c0_66, %c0_67, %c0_68] : memref<1x128x32xbf16, #tpu.memory_space<vmem>>, vector<1x128x32xbf16>
    %137 = vector.shape_cast %136 : vector<1x128x32xbf16> to vector<128x32xbf16>
    %cst_69 = arith.constant dense<0.000000e+00> : vector<2x32xf32>
    %138 = tpu.matmul %135, %137, %cst_69 {dimension_numbers = #tpu.dot_dimension_numbers<[1], [0], [0], [1], [0, 0, 1, 1], [], []>} : vector<2x128xbf16>, vector<128x32xbf16>, vector<2x32xf32> -> vector<2x32xf32>
    %c0_70 = arith.constant 0 : index
    %c5 = arith.constant 5 : index
    %c0_71 = arith.constant 0 : index
    %139 = vector.load %arg7[%c0_70, %c5, %c0_71] : memref<1x12x32xf32, #tpu.memory_space<vmem>>, vector<1x1x32xf32>
    %140 = vector.shape_cast %139 : vector<1x1x32xf32> to vector<1x32xf32>
    %141 = vector.broadcast %140 : vector<1x32xf32> to vector<2x32xf32>
    %142 = arith.addf %138, %141 : vector<2x32xf32>
    %143 = arith.addf %124, %142 : vector<2x32xf32>
    %cst_72 = arith.constant dense<0.000000e+00> : vector<2xf32>
    %144 = vector.multi_reduction <add>, %143, %cst_72 [1] : vector<2x32xf32> to vector<2xf32>
    %145 = vector.shape_cast %144 : vector<2xf32> to vector<2x1xf32>
    %cst_73 = arith.constant 3.200000e+01 : f32
    %146 = vector.broadcast %cst_73 : f32 to vector<2x1xf32>
    %147 = arith.divf %145, %146 : vector<2x1xf32>
    %148 = vector.broadcast %147 : vector<2x1xf32> to vector<2x32xf32>
    %149 = arith.subf %143, %148 : vector<2x32xf32>
    %150 = arith.mulf %149, %149 : vector<2x32xf32>
    %cst_74 = arith.constant dense<0.000000e+00> : vector<2xf32>
    %151 = vector.multi_reduction <add>, %150, %cst_74 [1] : vector<2x32xf32> to vector<2xf32>
    %152 = vector.shape_cast %151 : vector<2xf32> to vector<2x1xf32>
    %cst_75 = arith.constant 3.200000e+01 : f32
    %153 = vector.broadcast %cst_75 : f32 to vector<2x1xf32>
    %154 = arith.divf %152, %153 : vector<2x1xf32>
    %155 = vector.broadcast %147 : vector<2x1xf32> to vector<2x32xf32>
    %156 = arith.subf %143, %155 : vector<2x32xf32>
    %cst_76 = arith.constant 9.99999974E-6 : f32
    %157 = vector.broadcast %cst_76 : f32 to vector<2x1xf32>
    %158 = arith.addf %154, %157 : vector<2x1xf32>
    %159 = math.rsqrt %158 : vector<2x1xf32>
    %160 = vector.broadcast %159 : vector<2x1xf32> to vector<2x32xf32>
    %161 = arith.mulf %156, %160 : vector<2x32xf32>
    %c0_77 = arith.constant 0 : index
    %c10 = arith.constant 10 : index
    %c0_78 = arith.constant 0 : index
    %162 = vector.load %arg7[%c0_77, %c10, %c0_78] : memref<1x12x32xf32, #tpu.memory_space<vmem>>, vector<1x1x32xf32>
    %163 = vector.shape_cast %162 : vector<1x1x32xf32> to vector<1x32xf32>
    %164 = vector.broadcast %163 : vector<1x32xf32> to vector<2x32xf32>
    %165 = arith.mulf %161, %164 : vector<2x32xf32>
    %c0_79 = arith.constant 0 : index
    %c11 = arith.constant 11 : index
    %c0_80 = arith.constant 0 : index
    %166 = vector.load %arg7[%c0_79, %c11, %c0_80] : memref<1x12x32xf32, #tpu.memory_space<vmem>>, vector<1x1x32xf32>
    %167 = vector.shape_cast %166 : vector<1x1x32xf32> to vector<1x32xf32>
    %168 = vector.broadcast %167 : vector<1x32xf32> to vector<2x32xf32>
    %169 = arith.addf %165, %168 : vector<2x32xf32>
    %c0_81 = arith.constant 0 : index
    %c0_82 = arith.constant 0 : index
    %170 = vector.load %arg10[%c0_81, %c0_82] : memref<2x32xf32, #tpu.memory_space<vmem>>, vector<2x32xf32>
    tpu.vector_store %arg10[%c0_81, %c0_82], %169 {strides = array<i32>} : memref<2x32xf32, #tpu.memory_space<vmem>>, vector<2x32xf32>,
    %c1_i32 = arith.constant 1 : i32
    %171 = arith.cmpi eq, %arg0, %c1_i32 : i32
    %172 = arith.extui %171 : i1 to i32
    %c0_i32_83 = arith.constant 0 : i32
    %173 = arith.cmpi ne, %172, %c0_i32_83 : i32
    scf.if %173 {
      %c0_84 = arith.constant 0 : index
      %c0_85 = arith.constant 0 : index
      %174 = vector.load %arg9[%c0_84, %c0_85] : memref<2x32xf32, #tpu.memory_space<vmem>>, vector<2x32xf32>
      tpu.vector_store %arg9[%c0_84, %c0_85], %169 {strides = array<i32>} : memref<2x32xf32, #tpu.memory_space<vmem>>, vector<2x32xf32>,
    } else {
    }
    return
  }
  func.func @transform_0(%arg0: i32) -> (i32, i32) {
    %c0_i32 = arith.constant 0 : i32
    %c0_i32_0 = arith.constant 0 : i32
    %c0_i32_1 = arith.constant 0 : i32
    return %c0_i32, %c0_i32_0 : i32, i32
  }
  func.func @transform_2(%arg0: i32) -> (i32, i32, i32) {
    %c0_i32 = arith.constant 0 : i32
    %c0_i32_0 = arith.constant 0 : i32
    %c0_i32_1 = arith.constant 0 : i32
    %c0_i32_2 = arith.constant 0 : i32
    return %c0_i32, %c0_i32_0, %c0_i32_1 : i32, i32, i32
  }
  func.func @transform_3(%arg0: i32) -> (i32, i32) {
    %c0_i32 = arith.constant 0 : i32
    %c0_i32_0 = arith.constant 0 : i32
    %c0_i32_1 = arith.constant 0 : i32
    return %c0_i32, %c0_i32_0 : i32, i32
  }
  func.func @transform_4(%arg0: i32) -> (i32, i32, i32, i32) {
    %c0_i32 = arith.constant 0 : i32
    %c0_i32_0 = arith.constant 0 : i32
    %c0_i32_1 = arith.constant 0 : i32
    %c0_i32_2 = arith.constant 0 : i32
    return %arg0, %c0_i32, %c0_i32_0, %c0_i32_1 : i32, i32, i32, i32
  }
  func.func @transform_5(%arg0: i32) -> (i32, i32, i32) {
    %c0_i32 = arith.constant 0 : i32
    %c0_i32_0 = arith.constant 0 : i32
    %c0_i32_1 = arith.constant 0 : i32
    return %arg0, %c0_i32, %c0_i32_0 : i32, i32, i32
  }
  func.func @transform_6(%arg0: i32) -> (i32, i32, i32) {
    %c0_i32 = arith.constant 0 : i32
    %c0_i32_0 = arith.constant 0 : i32
    %c0_i32_1 = arith.constant 0 : i32
    return %arg0, %c0_i32, %c0_i32_0 : i32, i32, i32
  }
  func.func @transform_7(%arg0: i32) -> (i32, i32, i32) {
    %c0_i32 = arith.constant 0 : i32
    %c0_i32_0 = arith.constant 0 : i32
    %c0_i32_1 = arith.constant 0 : i32
    return %arg0, %c0_i32, %c0_i32_0 : i32, i32, i32
  }
  func.func @transform_8(%arg0: i32) -> (i32, i32) {
    %c0_i32 = arith.constant 0 : i32
    %c0_i32_0 = arith.constant 0 : i32
    %c0_i32_1 = arith.constant 0 : i32
    return %c0_i32, %c0_i32_0 : i32, i32
  }
}

</mosaic_0001>

<bundles_post_ra>
// kernel: tpu_custom_call.1
= control target key start
LH: loop header
LB: loop body
LE: loop exit
PB: predicated region body
PF: predicated region fallthrough
CT: control target
= control target key end

     0   :  { %13 = vsyncpa [#allocation6], 0  ;;  %s1552_s27 = smov 0   ;;  %s1732_s0 = inlined_call_operand.vmem [shape: f32[2,32], index: 0, kind: input, shape index: {}]   ;;  %s1733_s1 = inlined_call_operand.vmem [shape: bf16[2,8,32], index: 1, kind: input, shape index: {}]   ;;  %s1734_s2 = inlined_call_operand.vmem [shape: f32[2,1,8], index: 2, kind: input, shape index: {}]   ;;  %s1735_s3 = inlined_call_operand.vmem [shape: f32[4,32], index: 3, kind: input, shape index: {}]   ;;  %s1736_s4 = inlined_call_operand.vmem [shape: bf16[2,2,32,128], index: 4, kind: input, shape index: {}]   ;;  %s1737_s5 = inlined_call_operand.vmem [shape: bf16[2,128,32], index: 5, kind: input, shape index: {}]   ;;  %s1738_s6 = inlined_call_operand.vmem [shape: f32[2,12,32], index: 6, kind: input, shape index: {}]   ;;  %s1739_s7 = inlined_call_operand.vmem [shape: f32[2,1,128], index: 7, kind: input, shape index: {}]   ;;  %s1740_s8 = inlined_call_operand.hbm [shape: f32[2,32], index: 8, kind: output, shape index: {}]  }
   0x1 LB: > { %s1558_s28 = sadd.s32 4294967295, %s1498_s27   ;;  %p1244_p0 = scmp.ge.s32.totalorder %s1498_s27, 1  ;;  %s1498_s27 = sphi %s1552_s27, %s19_s27  }
   0x2   : > { %p262_p1 = scmp.lt.s32.totalorder %s1498_s27, 3 }
   0x4   : > { %p263_p2 = pnand %p1244_p0, %p262_p1 }
   0x5   : > { %p302_p3 = scmp.lt.s32.totalorder (!%p263_p2), %s1558_s28, 1  ;;  %p1251_p4 = scmp.ne.s32.totalorder (!%p263_p2), %s1558_s28, 0 }
   0x6   : > { %266 = sbr.rel (%p263_p2) target bundleno = 2511 (0x9cf), region = 48 }
   0xb   : > { %s1564_s29 = scalar_select %p302_p3, %s1558_s28, 1 }
   0xc   : > { %324 = sbr.rel (%p1251_p4) target bundleno = 23 (0x17), region = 52 }
   0xd   : > { %s1302_s30 = sshll.u32 %s1564_s29, 5  ;;  %s1303_s9 = sshll.u32 %s1564_s29, 6 }
   0xe   : > { %s1571_s12 = scalar_lea.vmem %s1736_s4, %s1302_s30  ;;  %s1576_s15 = scalar_lea.vmem %s1737_s5, %s1303_s9 }
   0xf   : > { %s1304_s16 = sshll.u32 %s1564_s29, 4  ;;  %s319_s19 = scalar_lea.vmem %s1739_s7, %s1564_s29 }
  0x10   : > { %s1586_s22 = scalar_lea.vmem %s1738_s6, %s1304_s16 }
  0x11   : > { %v325_v0 = vld [vmem:[%s1732_s0] sm:$0x3]  ;;  %vm326_vm0 = vcmask 254976  }
  0x12   : > { %v361_v1 = vld [vmem:[%s1733_s1] sm:$0xff]  ;;  %327 = vst.msk [vmem:[#allocation2] sm:$0x3] %vm326_vm0, %v325_v0 }
  0x13   : > { %362 = vst [vmem:[#allocation3] sm:$0xff] %v361_v1 }
  0x14   : > { %370 = vsyncadd [#allocation4], 128 }
  0x15   : > { %1490 = dma.done.wait [#allocation4], 128 }
  0x16   : > { %1491 = vsyncadd [#allocation4], 4294967168 }
  0x17 PF: > { %v1252_v3 = vld [vmem:[%s1586_s22] ss:$0 sm:$0xff]  ;;  %vm383_vm1 = vcmask 254976   ;;  %v1598_v6 = vld [vmem:[%s1571_s12 + $0x8] sm:$0xff]   ;;  %s1500_s30 = smov 64   ;;  %v1501_v14 = vmov 0.0   ;;  %v567_v29 = vlaneseq }
  0x18   : > { %432 = vrot.lane.b32.xlu1 %v1598_v6, %s1500_s30  ;;  %v1602_v7 = vld [vmem:[%s1571_s12] sm:$0xff]   ;;  %1338 = vmatprep.subr.bf16.mxu1 %v1501_v14  ;;  %vm1502_vm2 = vmmov 0   ;;  %vm436_vm3 = vcmask 261120   ;;  %v1503_v27 = vmov 1966171168   ;;  %vm706_vm4 = vcmask 60416  }
  0x19   : > { %v376_v2 = vld [vmem:[#allocation2] sm:$0x3]  ;;  %1342 = vmatprep.mubr.msk.bf16.mxu1 %vm1502_vm2, %v1501_v14  ;;  %1366 = vmatprep.subr.bf16.mxu0 %v1501_v14  ;;  %v1253_v20 = vld [vmem:[%s1586_s22 + $0x6] ss:$0 sm:$0xff]  ;;  %v1254_v22 = vld [vmem:[%s1586_s22 + $0x7] ss:$0 sm:$0xff]  ;;  %v565_v28 = vunpack.c.l.s4 %v1503_v27 }
  0x1a   : > { %v382_v4 = vadd.f32 %v1252_v3, %v376_v2  ;;  %1368 = vmatprep.mubr.msk.bf16.mxu0 %vm1502_vm2, %v1501_v14  ;;  %v1437_v26 = vld [vmem:[#allocation3] sm:$0xff]   ;;  %v568_v31 = vshrl.u32 %v567_v29, 7  ;;  %v1255_v32 = vld [vmem:[%s1586_s22 + $0x1] ss:$0 sm:$0xff]  ;;  %v1265_v63 = vld [vmem:[%s1734_s2] ss:$0 sm:$0xff] }
  0x1b   : > { %v566_v30 = vunpack.c.0.s8 %v565_v28  ;;  %v1261_v41 = vld [vmem:[%s1586_s22 + $0x2] ss:$0 sm:$0xff]  ;;  %s1504_s17 = smov 32   ;;  %s1505_s18 = smov 96   ;;  %vm738_vm5 = vcmask 1043456   ;;  %vm734_vm6 = vcmask 64512  }
  0x1c   : > { %v384_v5 = vsel %vm383_vm1, %v382_v4, 0.0  ;;  %430 = vrot.lane.b32.xlu1 %v1602_v7, %s1500_s30  ;;  %v588_v43 = vsub.s32 0, %v568_v31  ;;  %v1638_v50 = vld [vmem:[%s1735_s3] sm:$0xf]  ;;  %vm833_vm7 = vcmask 257024   ;;  %vm859_vm8 = vcmask 1041409  }
  0x1d   : > { %385 = vadd.xlane.f32.xlu0 %v384_v5  ;;  %v569_v35 = vsub.s32 %v566_v30, %v568_v31  ;;  %p1296_p5 = scmp.ne.s32.totalorder %s1558_s28, 1 }
  0x8a   : > { %v433_v13 = vpop.permute.xlu1 %432 }
  0x8b   : > { %1339 = vmatpush3.bf16.msra.mxu1 %v433_v13 }
  0x8c   : > { %1340 = vmatprep.subr.bf16.mxu1 %v1501_v14 }
  0x8e   : > { %v431_v15 = vpop.permute.xlu1 %430 }
  0x8f   : > { %1341 = vmatpush3.bf16.msra.mxu1 %v431_v15 }
  0x90   : > { %1346 = vmatprep.subr.bf16.mxu1 %v1501_v14 }
  0xa6   : > { %v386_v8 = vpop.xlane.xlu0 %385 }
  0xa7   : > { %v388_v9 = vmul.f32 0.03125, %v386_v8  ;;  %v1266_v8 = vld [vmem:[%s1734_s2 + $0x1] ss:$0 sm:$0xff] }
  0xa9   : > { %v389_v10 = vsub.f32 %v382_v4, %v388_v9 }
  0xab   : > { %v390_v11 = vmul.f32 %v389_v10, %v389_v10 }
  0xad   : > { %v391_v12 = vsel %vm383_vm1, %v390_v11, 0.0 }
  0xae   : > { %392 = vadd.xlane.f32.xlu0 %v391_v12 }
 0x137   : > { %v393_v16 = vpop.xlane.xlu0 %392 }
 0x138   : > { %v394_v17 = vmul.f32 0.03125, %v393_v16  ;;  %v1264_v16 = vld [vmem:[%s1586_s22 + $0x3] ss:$0 sm:$0xff] }
 0x13a   : > { %v395_v18 = vadd.f32 1e-05, %v394_v17 }
 0x13c   : > { %1448 = vrsqrt.f32 %v395_v18 }
 0x149   : > { %v1449_v19 = vpop.eup %1448 }
 0x14a   : > { %v397_v21 = vmul.f32 %v1449_v19, %v389_v10 }
 0x14c   : > { %v403_v23 = vmul.f32 %v1253_v20, %v397_v21 }
 0x14e   : > { %v1616_v24 = vadd.f32 %v1254_v22, %v403_v23 }
 0x150   : > { %v410_v25 = vpack.c.bf16 %v1616_v24, %v1616_v24 }
 0x152   : > { %1343 = vmatmul.mubr.msk.bf16.vlgmr.msra.gmra.mxu1 %vm436_vm3, %v410_v25 }
 0x153   : > { %1347 = vmatpush3.bf16.msra.mxu1 %v1598_v6  ;;  %1350 = vmatprep.mubr.msk.bf16.mxu1 %vm1502_vm2, %v1501_v14 }
 0x154   : > { %1348 = vmatprep.subr.bf16.mxu1 %v1501_v14 }
 0x157   : > { %1349 = vmatpush3.bf16.msra.mxu1 %v1602_v7 }
 0x158   : > { %1354 = vmatprep.subr.bf16.mxu1 %v1501_v14 }
 0x15a   : > { %1351 = vmatmul.mubr.msk.bf16.vlgmr.msra.gmra.mxu1 %vm436_vm3, %v1437_v26 }
 0x15b   : > { %1356 = vmatprep.mubr.msk.bf16.mxu1 %vm1502_vm2, %v1501_v14 }
 0x212   : > { %v474_v33 = vpop.f32.mrf.mxu1 }
 0x213   : > { %v475_v34 = vadd.f32 %v1255_v32, %v474_v33 }
 0x214   : > { %v1344_v36 = vpop.f32.mrf.mxu1 }
 0x215   : > { %v480_v37 = vmul.f32 0.35355338, %v475_v34 }
 0x216   : > { %v477_v38 = vpop.f32.mrf.mxu1 }
 0x217   : > { %v570_v39 = vrot.slane %v480_v37, %v569_v35 }
 0x218   : > { %v1345_v40 = vpop.f32.mrf.mxu1 }
 0x219   : > { %v578_v42 = vrot.slane %v570_v39, %v569_v35  ;;  %v571_v47 = vcombine.high %v570_v39, %v570_v39 }
 0x21a   : > { %v1632_v44 = vpop.f32.mrf.mxu1 }
 0x21b   : > { %v539_v45 = vadd.f32 %v1261_v41, %v1632_v44  ;;  %v589_v48 = vrot.slane %v578_v42, %v588_v43  ;;  %v585_v55 = vrot.slane %v571_v47, %v569_v35 }
 0x21c   : > { %v1352_v46 = vpop.f32.mrf.mxu1 }
 0x21d   : > { %v1305_v49 = vpack.c.bf16 %v539_v45, %v539_v45  ;;  %v596_v56 = vmul.f32 %v589_v48, %v1638_v50  ;;  %v593_v58 = vrot.slane %v585_v55, %v588_v43 }
 0x21e   : > { %v530_v51 = vpop.f32.mrf.mxu1 }
 0x21f   : > { %v540_v52 = vadd.f32 %v1261_v41, %v530_v51  ;;  %v618_v53 = vsel %vm436_vm3, %v1305_v49, 0  ;;  %v598_v59 = vpack.c.bf16 %v596_v56, %v596_v56  ;;  %v597_v61 = vmul.f32 %v593_v58, %v1638_v50 }
 0x220   : > { %v1353_v54 = vpop.f32.mrf.mxu1  ;;  %1355 = vmatpush3.bf16.xpose.msra.mxu1 %v618_v53 }
 0x221   : > { %1360 = vmatprep.subr.bf16.mxu1 %v1501_v14  ;;  %v1306_v57 = vpack.c.bf16 %v540_v52, %v540_v52  ;;  %v599_v62 = vpack.c.bf16 %v597_v61, %v597_v61 }
 0x223   : > { %v664_v60 = vsel %vm436_vm3, %v1306_v57, 0 }
 0x227   : > { %1357 = vmatmul.mubr.msk.bf16.vlgmr.msra.gmra.mxu1 %vm436_vm3, %v598_v59 }
 0x228   : > { %1361 = vmatpush3.bf16.xpose.msra.mxu1 %v664_v60  ;;  %1362 = vmatprep.mubr.msk.bf16.mxu1 %vm1502_vm2, %v1501_v14 }
 0x229   : > { %1372 = vmatprep.subr.bf16.mxu1 %v1501_v14 }
 0x22f   : > { %1363 = vmatmul.mubr.msk.bf16.vlgmr.msra.gmra.mxu1 %vm436_vm3, %v599_v62 }
 0x230   : > { %1374 = vmatprep.mubr.msk.bf16.mxu1 %vm1502_vm2, %v1501_v14 }
 0x2e7   : > { %v654_v0 = vpop.f32.mrf.mxu1 }
 0x2e8   : > { %v655_v1 = vadd.f32 %v1265_v63, %v654_v0 }
 0x2e9   : > { %v1358_v2 = vpop.f32.mrf.mxu1 }
 0x2ea   : > { %v707_v3 = vsel %vm706_vm4, %v655_v1, -inf }
 0x2eb   : > { %708 = vmax.xlane.f32.xlu0 %v707_v3  ;;  %v657_v4 = vpop.f32.mrf.mxu1 }
 0x2ed   : > { %v1359_v5 = vpop.f32.mrf.mxu1 }
 0x2ef   : > { %v700_v9 = vpop.f32.mrf.mxu1 }
 0x2f0   : > { %v701_v10 = vadd.f32 %v1266_v8, %v700_v9 }
 0x2f1   : > { %v1364_v11 = vpop.f32.mrf.mxu1 }
 0x2f2   : > { %v710_v12 = vsel %vm706_vm4, %v701_v10, -inf }
 0x2f3   : > { %711 = vmax.xlane.f32.xlu1 %v710_v12  ;;  %v703_v13 = vpop.f32.mrf.mxu1 }
 0x2f4   : > { %v1273_v13 = vld [vmem:[%s1586_s22 + $0x4] ss:$0 sm:$0xff] }
 0x2f5   : > { %v1365_v15 = vpop.f32.mrf.mxu1 }
 0x301   : > { %553 = vrot.lane.b32.xlu0 %v1264_v16, %s1504_s17 }
 0x374   : > { %v709_v17 = vpop.xlane.xlu0 %708 }
 0x375   : > { %v713_v18 = vsub.f32 %v655_v1, %v709_v17 }
 0x377   : > { %v715_v19 = vmul.f32 1.442695, %v713_v18 }
 0x378   : > { %v554_v28 = vpop.permute.xlu0 %553 }
 0x379   : > { %1450 = vpow2.f32 %v715_v19  ;;  %v557_v29 = vadd.f32 %v554_v28, %v530_v51  ;;  %v556_v30 = vadd.f32 %v554_v28, %v1632_v44  ;;  %v1438_v28 = vld [vmem:[%s1571_s12 + $0x18] sm:$0xff]  }
 0x37b   : > { %v1308_v31 = vpack.c.bf16 %v557_v29, %v557_v29  ;;  %v1307_v32 = vpack.c.bf16 %v556_v30, %v556_v30  ;;  %v1440_v29 = vld [vmem:[%s1576_s15 + $0x38] sm:$0xff]   ;;  %v1441_v30 = vld [vmem:[%s1576_s15 + $0x30] sm:$0xff]  }
 0x37c   : > { %v712_v20 = vpop.xlane.xlu1 %711 }
 0x37d   : > { %v714_v21 = vsub.f32 %v701_v10, %v712_v20 }
 0x37f   : > { %v717_v22 = vmul.f32 1.442695, %v714_v21 }
 0x381   : > { %1452 = vpow2.f32 %v717_v22 }
 0x386   : > { %v1451_v23 = vpop.eup %1450 }
 0x387   : > { %v719_v25 = vsel %vm706_vm4, %v1451_v23, 0.0 }
 0x388   : > { %720 = vadd.xlane.f32.xlu0 %v719_v25 }
 0x38e   : > { %v1453_v26 = vpop.eup %1452 }
 0x38f   : > { %v722_v27 = vsel %vm706_vm4, %v1453_v26, 0.0 }
 0x390   : > { %723 = vadd.xlane.f32.xlu1 %v722_v27 }
 0x39e   : > { %783 = vrot.lane.b32.xlu0 %v1308_v31, %s1505_s18  ;;  %v1442_v31 = vld [vmem:[%s1576_s15 + $0x28] sm:$0xff]  }
 0x3a1   : > { %732 = vrot.lane.b32.xlu1 %v1307_v32, %s1505_s18  ;;  %v1443_v32 = vld [vmem:[%s1576_s15 + $0x20] sm:$0xff]  }
 0x3a5   : > { %864 = vrot.lane.b32.xlu1 %v1598_v6, %s1504_s17 }
 0x3a9   : > { %862 = vrot.lane.b32.xlu1 %v1602_v7, %s1504_s17 }
 0x411   : > { %v721_v33 = vpop.xlane.xlu0 %720 }
 0x412   : > { %1454 = vrcp.f32 %v721_v33  ;;  %v1444_v33 = vld [vmem:[%s1576_s15 + $0x18] sm:$0xff]  }
 0x415   : > { %v784_v34 = vpop.permute.xlu0 %783 }
 0x416   : > { %v789_v35 = vsel %vm738_vm5, %v784_v34, 0  ;;  %v1445_v34 = vld [vmem:[%s1576_s15 + $0x10] sm:$0xff]  }
 0x417   : > { %1373 = vmatpush3.bf16.msra.mxu1 %v789_v35 }
 0x418   : > { %1386 = vmatprep.subr.bf16.mxu1 %v1501_v14 }
 0x419   : > { %v724_v36 = vpop.xlane.xlu1 %723 }
 0x41a   : > { %1456 = vrcp.f32 %v724_v36 }
 0x41d   : > { %v733_v37 = vpop.permute.xlu1 %732 }
 0x41e   : > { %v740_v38 = vsel %vm738_vm5, %v733_v37, 0 }
 0x41f   : > { %v1455_v39 = vpop.eup %1454  ;;  %1367 = vmatpush3.bf16.msra.mxu0 %v740_v38 }
 0x420   : > { %v727_v40 = vmul.f32 %v1455_v39, %v1451_v23  ;;  %1378 = vmatprep.subr.bf16.mxu0 %v1501_v14  ;;  %v1275_v39 = vld [vmem:[%s1586_s22 + $0x8] ss:$0 sm:$0xff] }
 0x421   : > { %v865_v43 = vpop.permute.xlu1 %864 }
 0x422   : > { %v729_v6 = vpack.c.bf16 %v727_v40, %v727_v40 }
 0x424   : > { %1369 = vmatmul.mubr.msk.bf16.vlgmr.msra.gmra.mxu0 %vm734_vm6, %v729_v6  ;;  %v1276_v6 = vld [vmem:[%s1586_s22 + $0x9] ss:$0 sm:$0xff] }
 0x425   : > { %1382 = vmatprep.mubr.msk.bf16.mxu0 %vm1502_vm2, %v1501_v14  ;;  %1379 = vmatpush3.bf16.msra.mxu0 %v865_v43  ;;  %v863_v44 = vpop.permute.xlu1 %862  ;;  %v1446_v43 = vld [vmem:[%s1576_s15 + $0x8] sm:$0xff]  }
 0x426   : > { %1380 = vmatprep.subr.bf16.mxu0 %v1501_v14 }
 0x427   : > { %v1457_v7 = vpop.eup %1456 }
 0x428   : > { %v728_v41 = vmul.f32 %v1457_v7, %v1453_v26 }
 0x429   : > { %1381 = vmatpush3.bf16.msra.mxu0 %v863_v44  ;;  %v1447_v44 = vld [vmem:[%s1576_s15] sm:$0xff]  }
 0x42a   : > { %v730_v42 = vpack.c.bf16 %v728_v41, %v728_v41  ;;  %1394 = vmatprep.subr.bf16.mxu0 %v1501_v14 }
 0x42c   : > { %1375 = vmatmul.mubr.msk.bf16.vlgmr.msra.gmra.mxu1 %vm734_vm6, %v730_v42 }
 0x42d   : > { %1390 = vmatprep.mubr.msk.bf16.mxu1 %vm1502_vm2, %v1501_v14  ;;  %1387 = vmatpush3.bf16.msra.mxu1 %v1438_v28 }
 0x42e   : > { %1388 = vmatprep.subr.bf16.mxu1 %v1501_v14 }
 0x4e4   : > { %v776_v45 = vpop.f32.mrf.mxu0 }
 0x4e5   : > { %v831_v46 = vmul.f32 %v776_v45, %v1638_v50  ;;  %v1281_v45 = vld [vmem:[%s319_s19] ss:$0 sm:$0xff] }
 0x4e6   : > { %v1370_v47 = vpop.f32.mrf.mxu0 }
 0x4e7   : > { %v834_v48 = vsel %vm833_vm7, %v831_v46, 0.0 }
 0x4e8   : > { %v835_v49 = vrot.slane %v834_v48, 4  ;;  %v779_v51 = vpop.f32.mrf.mxu0 }
 0x4ea   : > { %v836_v52 = vadd.f32 %v835_v49, %v834_v48  ;;  %v1371_v53 = vpop.f32.mrf.mxu0 }
 0x4ec   : > { %v837_v54 = vrot.slane %v836_v52, 2  ;;  %v825_v55 = vpop.f32.mrf.mxu1 }
 0x4ed   : > { %v832_v56 = vmul.f32 %v825_v55, %v1638_v50 }
 0x4ee   : > { %v838_v57 = vadd.f32 %v837_v54, %v836_v52  ;;  %v1376_v58 = vpop.f32.mrf.mxu1  ;;  %v1285_v54 = vld [vmem:[%s1586_s22 + $0x5] ss:$0 sm:$0xff] }
 0x4ef   : > { %v841_v59 = vsel %vm833_vm7, %v832_v56, 0.0 }
 0x4f0   : > { %v842_v60 = vrot.slane %v841_v59, 4  ;;  %v828_v61 = vpop.f32.mrf.mxu1  ;;  %v839_v62 = vrot.slane %v838_v57, 1 }
 0x4f2   : > { %v843_v63 = vadd.f32 %v842_v60, %v841_v59  ;;  %v1377_v0 = vpop.f32.mrf.mxu1  ;;  %v840_v2 = vadd.f32 %v839_v62, %v838_v57 }
 0x4f4   : > { %v844_v1 = vrot.slane %v843_v63, 2  ;;  %v848_v5 = vpack.c.bf16 %v840_v2, %v840_v2 }
 0x4f6   : > { %v845_v3 = vadd.f32 %v844_v1, %v843_v63  ;;  %v857_v10 = vunpack.c.l.b16 %v848_v5 }
 0x4f8   : > { %v846_v4 = vrot.slane %v845_v3, 1 }
 0x4fa   : > { %v847_v8 = vadd.f32 %v846_v4, %v845_v3 }
 0x4fc   : > { %v849_v9 = vpack.c.bf16 %v847_v8, %v847_v8  ;;  %v1294_v8 = vld [vmem:[%s1586_s22 + $0xa] ss:$0 sm:$0xff] }
 0x4fe   : > { %v858_v11 = vunpack.c.l.b16 %v849_v9 }
 0x500   : > { %v860_v50 = vsel %vm859_vm8, %v858_v11, %v857_v10  ;;  %v1295_v10 = vld [vmem:[%s1586_s22 + $0xb] ss:$0 sm:$0xff] }
 0x501   : > { %v861_v12 = vpack.c.b16 %v860_v50, %v860_v50 }
 0x503   : > { %1383 = vmatmul.mubr.msk.bf16.vlgmr.msra.gmra.mxu0 %vm436_vm3, %v861_v12 }
 0x504   : > { %1410 = vmatprep.mubr.msk.bf16.mxu0 %vm1502_vm2, %v1501_v14  ;;  %1395 = vmatpush3.bf16.msra.mxu0 %v1440_v29 }
 0x505   : > { %1396 = vmatprep.subr.bf16.mxu0 %v1501_v14 }
 0x508   : > { %1397 = vmatpush3.bf16.msra.mxu0 %v1441_v30 }
 0x509   : > { %1398 = vmatprep.subr.bf16.mxu0 %v1501_v14 }
 0x50c   : > { %1399 = vmatpush3.bf16.msra.mxu0 %v1442_v31 }
 0x50d   : > { %1400 = vmatprep.subr.bf16.mxu0 %v1501_v14 }
 0x510   : > { %1401 = vmatpush3.bf16.msra.mxu0 %v1443_v32 }
 0x511   : > { %1402 = vmatprep.subr.bf16.mxu0 %v1501_v14 }
 0x514   : > { %1403 = vmatpush3.bf16.msra.mxu0 %v1444_v33 }
 0x515   : > { %1404 = vmatprep.subr.bf16.mxu0 %v1501_v14 }
 0x518   : > { %1405 = vmatpush3.bf16.msra.mxu0 %v1445_v34 }
 0x519   : > { %1406 = vmatprep.subr.bf16.mxu0 %v1501_v14 }
 0x51c   : > { %1407 = vmatpush3.bf16.msra.mxu0 %v1446_v43 }
 0x51d   : > { %1408 = vmatprep.subr.bf16.mxu0 %v1501_v14 }
 0x520   : > { %1409 = vmatpush3.bf16.msra.mxu0 %v1447_v44 }
 0x5c3   : > { %v905_v15 = vpop.f32.mrf.mxu0 }
 0x5c4   : > { %v906_v16 = vadd.f32 %v1273_v13, %v905_v15 }
 0x5c5   : > { %v1384_v17 = vpop.f32.mrf.mxu0 }
 0x5c6   : > { %v911_v18 = vadd.f32 %v906_v16, %v1616_v24  ;;  %v1439_v24 = vld [vmem:[%s1571_s12 + $0x10] sm:$0xff]  }
 0x5c7   : > { %v908_v19 = vpop.f32.mrf.mxu0  ;;  %1389 = vmatpush3.bf16.msra.mxu1 %v1439_v24 }
 0x5c8   : > { %v912_v20 = vsel %vm383_vm1, %v911_v18, 0.0 }
 0x5c9   : > { %913 = vadd.xlane.f32.xlu1 %v912_v20  ;;  %v1385_v21 = vpop.f32.mrf.mxu0 }
 0x652   : > { %v914_v22 = vpop.xlane.xlu1 %913 }
 0x653   : > { %v915_v23 = vmul.f32 0.03125, %v914_v22 }
 0x655   : > { %v916_v25 = vsub.f32 %v911_v18, %v915_v23 }
 0x657   : > { %v917_v26 = vmul.f32 %v916_v25, %v916_v25 }
 0x659   : > { %v918_v27 = vsel %vm383_vm1, %v917_v26, 0.0 }
 0x65a   : > { %919 = vadd.xlane.f32.xlu0 %v918_v27 }
 0x6e3   : > { %v920_v35 = vpop.xlane.xlu0 %919 }
 0x6e4   : > { %v921_v36 = vmul.f32 0.03125, %v920_v35 }
 0x6e6   : > { %v922_v37 = vadd.f32 1e-05, %v921_v36 }
 0x6e8   : > { %1458 = vrsqrt.f32 %v922_v37 }
 0x6f5   : > { %v1459_v38 = vpop.eup %1458 }
 0x6f6   : > { %v924_v40 = vmul.f32 %v1459_v38, %v916_v25 }
 0x6f8   : > { %v930_v7 = vmul.f32 %v1275_v39, %v924_v40 }
 0x6fa   : > { %v936_v41 = vadd.f32 %v1276_v6, %v930_v7 }
 0x6fc   : > { %v937_v42 = vpack.c.bf16 %v936_v41, %v936_v41 }
 0x6fe   : > { %1391 = vmatmul.mubr.msk.bf16.vlgmr.msra.gmra.mxu1 %vm436_vm3, %v937_v42 }
 0x7be   : > { %v999_v46 = vpop.f32.mrf.mxu1 }
 0x7bf   : > { %v1000_v47 = vadd.f32 %v1281_v45, %v999_v46 }
 0x7c0   : > { %v1392_v48 = vpop.f32.mrf.mxu1 }
 0x7c1   : > { %v1005_v49 = vmax.f32 %v1000_v47, 0.0 }
 0x7c2   : > { %v1002_v51 = vpop.f32.mrf.mxu1 }
 0x7c3   : > { %v1006_v52 = vpack.c.bf16 %v1005_v49, %v1005_v49 }
 0x7c4   : > { %v1393_v53 = vpop.f32.mrf.mxu1 }
 0x7c5   : > { %1411 = vmatmul.mubr.bf16.vlgmr.msra.gmra.mxu0 %v1006_v52 }
 0x885   : > { %v1110_v55 = vpop.f32.mrf.mxu0 }
 0x886   : > { %v1111_v56 = vadd.f32 %v1285_v54, %v1110_v55 }
 0x887   : > { %v1412_v57 = vpop.f32.mrf.mxu0 }
 0x888   : > { %v1116_v14 = vadd.f32 %v1111_v56, %v936_v41 }
 0x889   : > { %v1113_v58 = vpop.f32.mrf.mxu0 }
 0x88a   : > { %v1117_v59 = vsel %vm383_vm1, %v1116_v14, 0.0 }
 0x88b   : > { %1118 = vadd.xlane.f32.xlu1 %v1117_v59  ;;  %v1413_v60 = vpop.f32.mrf.mxu0 }
 0x914   : > { %v1119_v61 = vpop.xlane.xlu1 %1118 }
 0x915   : > { %v1120_v62 = vmul.f32 0.03125, %v1119_v61 }
 0x917   : > { %v1121_v63 = vsub.f32 %v1116_v14, %v1120_v62 }
 0x919   : > { %v1122_v0 = vmul.f32 %v1121_v63, %v1121_v63 }
 0x91b   : > { %v1123_v1 = vsel %vm383_vm1, %v1122_v0, 0.0 }
 0x91c   : > { %1124 = vadd.xlane.f32.xlu1 %v1123_v1 }
 0x9a5   : > { %v1125_v2 = vpop.xlane.xlu1 %1124 }
 0x9a6   : > { %v1126_v3 = vmul.f32 0.03125, %v1125_v2 }
 0x9a8   : > { %v1127_v4 = vadd.f32 1e-05, %v1126_v3 }
 0x9aa   : > { %1460 = vrsqrt.f32 %v1127_v4 }
 0x9b7   : > { %v1461_v5 = vpop.eup %1460 }
 0x9b8   : > { %v1129_v9 = vmul.f32 %v1461_v5, %v1121_v63 }
 0x9ba   : > { %v1135_v11 = vmul.f32 %v1294_v8, %v1129_v9  ;;  %1146 = sbr.rel (%p1296_p5) target bundleno = 2496 (0x9c0), region = 90 }
 0x9bc   : > { %v1141_v50 = vadd.f32 %v1295_v10, %v1135_v11 }
 0x9be   : > { %1142 = vst.msk [vmem:[#allocation2] sm:$0x3] %vm383_vm1, %v1141_v50 }
 0x9bf   : > { %1147 = vst.msk [vmem:[#allocation5] sm:$0x3] %vm383_vm1, %v1141_v50 }
 0x9c0 PF: > { %p1418_p6 = scmp.eq.s32.totalorder %s1558_s28, 1  ;;  %s1506_s29 = smov [#allocation5]  }
 0x9c1   : > { %s1155_s15 = sshll.u32 %s1506_s29, 4  ;;  %s1156_s15 = int_to_ptr.vmem [resolvable:$true] %s1155_s15 }
 0x9c2   : > { %s1462_s19 = scalar_lea.vmem %s1156_s15, 32  ;;  %p1469_p10 = scmp.lt.s32.totalorder %s1156_s15, %s1156_s15 }
 0x9c3   : > { %p1463_p7 = scmp.ne.s32.totalorder %s1156_s15, %s1462_s19  ;;  %p1470_p11 = scmp.lt.s32.totalorder %s1462_s19, %s1462_s19 }
 0x9c5   : > { %p1464_p8 = pnand %p1463_p7, %p1418_p6  ;;  %p1471_p12 = por %p1470_p11, %p1469_p10 }
 0x9c7   : > { %p1465_p9 = pneg %p1464_p8 }
 0x9c9   : > { %p1472_p13 = pnand %p1471_p12, %p1465_p9 }
 0x9cb   : > { %1475 = shalt.err (!%p1472_p13)
}
 0x9cc   : > { %1415 = dma.vmem_to_hbm [thread:$0]  (%p1418_p6), %s1156_s15, 32, %s1740_s8, [#allocation6]  }
 0x9cd   : > { %1493 = dma.done.wait (%p1418_p6), [#allocation6], 32  }
 0x9ce   : > { %1495 = vsyncadd (%p1418_p6), [#allocation6], 4294967264 }
 0x9cf PF: > { %s19_s27 = sadd.s32 1, %s1498_s27  }
 0x9d0   : > { %p16_p0 = scmp.ge.s32.totalorder %s19_s27, 4  }
 0x9d2   :  { %18 = sbr.rel (!%p16_p0) target bundleno = 1 (0x1), region = 135 }
 0x9d7   :  { %1168 = vsyncpa [#allocation6], 1 }
 0x9d8   :  { %1170 = vsyncpa [#allocation6 + $0x1], 1 }
 0x9d9   :  { %1171 = vsyncmov [#allocation4] }
 0x9dc   :  { %s1172_s23 = vpop.sfrf %1171 }
 0x9dd   :  { %p1301_p1 = scmp.ne.s32.totalorder %s1172_s23, 0 }
 0x9df   :  { %1176 = shalt.err (%p1301_p1)  }

</bundles_post_ra>
